<compile_context>
chip_gen: v7x
topology: tpu7x:2x2x1
jax: 0.10.0
libtpu: 0.0.40
codegen_flags: <defaults>
</compile_context>

<pallas_src>
import functools

import jax
import jax.numpy as jnp
from jax import lax
from jax.experimental import pallas as pl
from jax.experimental.pallas import tpu as pltpu


def _round_up(v, m):
    return ((v + m - 1) // m) * m


def _conv_rows_kernel(x_ref, rhs_ref, scale_ref, shift_ref, o_ref, *,
                      k, stride, th, apply_relu):
    # x_ref     : (Hp_pad, Wp*Cin)    whole padded image of batch n (resident across row tiles)
    # rhs_ref   : (k, Wp*Cin, lanes)  per-kh Toeplitz-over-W weight matrices (resident)
    # scale_ref : (1, lanes) f32      BN scale per lane (lane = wo*Cout + co)
    # shift_ref : (1, lanes) f32      BN shift / conv bias per lane
    # o_ref     : (th, lanes)         lane-dense output row tile
    t = pl.program_id(1)
    row0 = pl.multiple_of(t * (th * stride), th * stride)

    acc = None
    if stride == 1:
        # k accumulating dots; the bands overlap but only in VMEM->vreg loads (cheap), not HBM.
        for kh in range(k):
            band = x_ref[pl.ds(row0 + kh, th), :]
            d = jnp.dot(band, rhs_ref[kh], preferred_element_type=jnp.float32)
            acc = d if acc is None else acc + d
    else:
        # General-stride path (not exercised by the example): one contiguous chunk load, then
        # static strided value slices per kh band.
        chunk = x_ref[pl.ds(row0, (th - 1) * stride + k), :]
        for kh in range(k):
            band = chunk[kh:kh + (th - 1) * stride + 1:stride]
            d = jnp.dot(band, rhs_ref[kh], preferred_element_type=jnp.float32)
            acc = d if acc is None else acc + d

    y = acc * scale_ref[...] + shift_ref[...]
    if apply_relu:
        y = jnp.maximum(y, 0.0)
    o_ref[...] = y.astype(o_ref.dtype)


def conv2d_bn_relu(x_nchw, weight_oihw, *, stride=1, padding=1, relu=True,
                   gamma=None, beta=None, running_mean=None, running_var=None,
                   bias=None, eps=1e-5, compute_dtype=jnp.float32,
                   out_dtype=None, block_h=256):
    """Forward of the `Conv2d` module (conv -> eval-mode BN -> ReLU).

    x_nchw: (N, Cin, H, W); weight_oihw: (Cout, Cin, k, k).
    If `gamma` is None, BN is disabled and `bias` (if given) is added instead.
    """
    N, Cin, H, W = x_nchw.shape
    Cout, Cin2, kh_, kw_ = weight_oihw.shape
    assert Cin2 == Cin and kh_ == kw_, "square kernels only"
    k = kh_
    Hp, Wp = H + 2 * padding, W + 2 * padding
    Ho = (Hp - k) // stride + 1
    Wo = (Wp - k) // stride + 1
    lanes = Wo * Cout                    # output lane width (wo-major, co-minor)
    Kb = Wp * Cin                        # per-kh contraction length
    out_dtype = compute_dtype if out_dtype is None else out_dtype

    # ---- fold BN (eval mode) into per-channel scale/shift (applied in the f32 epilogue) -----
    if gamma is not None:
        inv = gamma.astype(jnp.float32) * lax.rsqrt(running_var.astype(jnp.float32) + eps)
        scale_c = inv
        shift_c = beta.astype(jnp.float32) - running_mean.astype(jnp.float32) * inv
        if bias is not None:             # BN(conv + bias): bias flows through the scale too
            shift_c = shift_c + bias.astype(jnp.float32) * inv
    else:
        scale_c = jnp.ones((Cout,), jnp.float32)
        shift_c = (bias.astype(jnp.float32) if bias is not None
                   else jnp.zeros((Cout,), jnp.float32))
    scale_row = jnp.tile(scale_c, Wo).reshape(1, lanes)
    shift_row = jnp.tile(shift_c, Wo).reshape(1, lanes)

    # ---- row tiling over output rows (per batch) ----------------------------------------------
    mult = 16 if jnp.dtype(compute_dtype).itemsize < 4 else 8
    th = _round_up(max(1, min(block_h, Ho)), mult)
    T = pl.cdiv(Ho, th)
    if N * T < 2 and Ho > mult:          # keep >= 2 grid steps for the 2 TCs on v7x
        th = _round_up(pl.cdiv(Ho, 2), mult)
        T = pl.cdiv(Ho, th)
    Ho_pad = T * th

    # ---- activations: single pass, in compute dtype, no k-fold duplication --------------------
    # TODO(synk): if the surrounding model runs NHWC, this transpose (and the final one back to
    #             NCHW) can be dropped entirely.
    x = jnp.transpose(x_nchw.astype(compute_dtype), (0, 2, 3, 1))          # (N, H, W, Cin)
    Hp_pad = max(Hp, (Ho_pad - 1) * stride + k)                            # keep tile reads in-bounds
    xp = jnp.pad(x, ((0, 0), (padding, Hp_pad - H - padding),
                     (padding, padding), (0, 0)))
    lhs = xp.reshape(N, Hp_pad, Kb)

    # ---- weights: per-kh Toeplitz-over-W expansion (weights-only, tiny) -----------------------
    #   rhs[kh, wi*Cin+ci, wo*Cout+co] = w[co, ci, kh, wi - wo*stride]  if 0 <= wi-wo*stride < k
    w_t = jnp.transpose(weight_oihw.astype(jnp.float32), (2, 3, 1, 0))     # (kh, kw, Cin, Cout)
    kw_rel = jnp.arange(Wp)[:, None] - jnp.arange(Wo)[None, :] * stride    # (Wp, Wo)
    valid = (kw_rel >= 0) & (kw_rel < k)
    g = jnp.take(w_t, jnp.clip(kw_rel, 0, k - 1), axis=1)                  # (kh, Wp, Wo, Cin, Cout)
    g = jnp.where(valid[None, :, :, None, None], g, 0.0)
    rhs = jnp.transpose(g, (0, 1, 3, 2, 4)).reshape(k, Kb, lanes).astype(compute_dtype)

    # ---- VMEM budget (accurate padded footprint + headroom, capped at ~80% of device VMEM) ----
    in_it = jnp.dtype(compute_dtype).itemsize
    out_it = jnp.dtype(out_dtype).itemsize
    sub_in = 8 * (4 // in_it)
    sub_out = 8 * (4 // out_it)
    lanes_r = _round_up(lanes, 128)
    footprint = (2 * _round_up(Hp_pad, sub_in) * _round_up(Kb, 128) * in_it     # image block (dbl-buf)
                 + 2 * k * _round_up(Kb, sub_in) * lanes_r * in_it              # Toeplitz weights
                 + 2 * 2 * 8 * lanes_r * 4                                      # scale + shift rows
                 + 2 * _round_up(th, sub_out) * lanes_r * out_it                # output tiles
                 + _round_up(th, 8) * lanes_r * 4)                              # f32 accumulator
    try:
        cap = int(getattr(pltpu.get_tpu_info(), "vmem_capacity_bytes", 64 * 1024 * 1024))
    except Exception:
        cap = 64 * 1024 * 1024
    vmem_limit = int(max(min(footprint + 8 * 1024 * 1024, (cap * 4) // 5), 4 * 1024 * 1024))

    cost = pl.CostEstimate(
        flops=2 * N * Ho_pad * k * Kb * lanes,
        transcendentals=0,
        bytes_accessed=(N * Hp_pad * Kb * in_it + k * Kb * lanes * in_it
                        + 2 * lanes * 4 + N * Ho_pad * lanes * out_it))

    out_mat = pl.pallas_call(
        functools.partial(_conv_rows_kernel, k=k, stride=stride, th=th, apply_relu=relu),
        out_shape=jax.ShapeDtypeStruct((N, Ho_pad, lanes), out_dtype),
        grid_spec=pltpu.PrefetchScalarGridSpec(
            num_scalar_prefetch=0,
            grid=(N, T),
            in_specs=[
                # whole padded image of batch n; constant index over t -> fetched once per batch
                pl.BlockSpec((None, Hp_pad, Kb), lambda n, t: (n, 0, 0)),
                pl.BlockSpec((k, Kb, lanes), lambda n, t: (0, 0, 0)),
                pl.BlockSpec((1, lanes), lambda n, t: (0, 0)),
                pl.BlockSpec((1, lanes), lambda n, t: (0, 0)),
            ],
            out_specs=pl.BlockSpec((None, th, lanes), lambda n, t: (n, t, 0)),
        ),
        compiler_params=pltpu.CompilerParams(
            dimension_semantics=("parallel", "parallel"),
            vmem_limit_bytes=vmem_limit,
        ),
        cost_estimate=cost,
    )(lhs, rhs, scale_row, shift_row)

    out = out_mat[:, :Ho, :].reshape(N, Ho, Wo, Cout)
    return jnp.transpose(out, (0, 3, 1, 2))          # back to PyTorch NCHW


def _reference(x, w, gamma, beta, mean, var, eps=1e-5, relu=True):
    conv = lax.conv_general_dilated(
        x.astype(jnp.float32), w.astype(jnp.float32),
        window_strides=(1, 1), padding=[(1, 1), (1, 1)],
        dimension_numbers=("NCHW", "OIHW", "NCHW"),
        precision=lax.Precision.HIGHEST)
    inv = (gamma / jnp.sqrt(var + eps)).reshape(1, -1, 1, 1)
    shift = (beta - mean * gamma / jnp.sqrt(var + eps)).reshape(1, -1, 1, 1)
    y = conv * inv + shift
    return jnp.maximum(y, 0.0) if relu else y


if __name__ == "__main__":
    # Module config: Conv2d(in_channels=4, out_channels=8, kernel_size=3, stride=1, padding=1)
    N, Cin, Cout, H, W, k = 2, 4, 8, 16, 16, 3

    key = jax.random.PRNGKey(0)
    kx, kw, kg, kb, km, kv = jax.random.split(key, 6)
    x = jax.random.normal(kx, (N, Cin, H, W), dtype=jnp.float32)
    weight = 0.1 * jax.random.normal(kw, (Cout, Cin, k, k), dtype=jnp.float32)
    gamma = jax.random.uniform(kg, (Cout,), jnp.float32, 0.5, 1.5)
    beta = 0.1 * jax.random.normal(kb, (Cout,), dtype=jnp.float32)
    running_mean = 0.1 * jax.random.normal(km, (Cout,), dtype=jnp.float32)
    running_var = jax.random.uniform(kv, (Cout,), jnp.float32, 0.5, 1.5)

    ref = _reference(x, weight, gamma, beta, running_mean, running_var)

    # f32 path, small row tile (th=8) -> grid (2 batches, 2 row tiles) exercises both grid axes.
    out = conv2d_bn_relu(x, weight, stride=1, padding=1, relu=True,
                         gamma=gamma, beta=beta,
                         running_mean=running_mean, running_var=running_var,
                         compute_dtype=jnp.float32, block_h=8)
    out = jax.block_until_ready(out)
    assert out.shape == (N, Cout, H, W), out.shape
    assert jnp.allclose(out, ref, atol=1e-2, rtol=1e-2), float(jnp.max(jnp.abs(out - ref)))

    # bf16 MXU path (bf16 activations/weights, f32 accumulation + f32 BN epilogue, bf16 output).
    out_bf16 = conv2d_bn_relu(x, weight, stride=1, padding=1, relu=True,
                              gamma=gamma, beta=beta,
                              running_mean=running_mean, running_var=running_var,
                              compute_dtype=jnp.bfloat16, block_h=256)
    out_bf16 = jax.block_until_ready(out_bf16)
    assert out_bf16.dtype == jnp.bfloat16
    assert jnp.allclose(out_bf16.astype(jnp.float32), ref, atol=5e-2, rtol=5e-2), \
        float(jnp.max(jnp.abs(out_bf16.astype(jnp.float32) - ref)))

    print("KERNEL_OK")
</pallas_src>

<mosaic_0001>
module attributes {stable_mosaic.version = 11 : i64} {
  func.func @_conv_rows_kernel(%arg0: i32, %arg1: i32, %arg2: memref<1x18x72xf32, #tpu.memory_space<vmem>>, %arg3: memref<3x72x128xf32, #tpu.memory_space<vmem>>, %arg4: memref<1x128xf32, #tpu.memory_space<vmem>>, %arg5: memref<1x128xf32, #tpu.memory_space<vmem>>, %arg6: memref<1x8x128xf32, #tpu.memory_space<vmem>>) attributes {dimension_semantics = [#tpu.dimension_semantics<parallel>, #tpu.dimension_semantics<parallel>], iteration_bounds = array<i64: 2, 2>, scalar_prefetch = 0 : i64, scratch_operands = 0 : i64, tpu.core_type = #tpu.core_type<tc>, window_params = [{transform_indices = @transform_0, window_bounds = array<i64: 1, 18, 72>}, {pipeline_mode = #tpu.pipeline_mode<synchronous>, transform_indices = @transform_1, window_bounds = array<i64: 3, 72, 128>}, {pipeline_mode = #tpu.pipeline_mode<synchronous>, transform_indices = @transform_2, window_bounds = array<i64: 1, 128>}, {pipeline_mode = #tpu.pipeline_mode<synchronous>, transform_indices = @transform_3, window_bounds = array<i64: 1, 128>}, {transform_indices = @transform_4, window_bounds = array<i64: 1, 8, 128>}]} {
    %c8_i32 = arith.constant 8 : i32
    %0 = arith.muli %arg1, %c8_i32 : i32
    %1 = tpu.assume_multiple %0, 8 : i32
    %c0_i32 = arith.constant 0 : i32
    %2 = arith.addi %1, %c0_i32 : i32
    %c0 = arith.constant 0 : index
    %3 = arith.index_cast %2 : i32 to index
    %c0_0 = arith.constant 0 : index
    %4 = vector.load %arg2[%c0, %3, %c0_0] : memref<1x18x72xf32, #tpu.memory_space<vmem>>, vector<1x8x72xf32>
    %5 = vector.shape_cast %4 : vector<1x8x72xf32> to vector<8x72xf32>
    %c0_1 = arith.constant 0 : index
    %c0_2 = arith.constant 0 : index
    %c0_3 = arith.constant 0 : index
    %6 = vector.load %arg3[%c0_1, %c0_2, %c0_3] : memref<3x72x128xf32, #tpu.memory_space<vmem>>, vector<1x72x128xf32>
    %7 = vector.shape_cast %6 : vector<1x72x128xf32> to vector<72x128xf32>
    %cst = arith.constant dense<0.000000e+00> : vector<8x128xf32>
    %8 = tpu.matmul %5, %7, %cst {dimension_numbers = #tpu.dot_dimension_numbers<[1], [0], [0], [1], [0, 0, 1, 1], [], []>} : vector<8x72xf32>, vector<72x128xf32>, vector<8x128xf32> -> vector<8x128xf32>
    %c1_i32 = arith.constant 1 : i32
    %9 = arith.addi %1, %c1_i32 : i32
    %c0_4 = arith.constant 0 : index
    %10 = arith.index_cast %9 : i32 to index
    %c0_5 = arith.constant 0 : index
    %11 = vector.load %arg2[%c0_4, %10, %c0_5] : memref<1x18x72xf32, #tpu.memory_space<vmem>>, vector<1x8x72xf32>
    %12 = vector.shape_cast %11 : vector<1x8x72xf32> to vector<8x72xf32>
    %c1 = arith.constant 1 : index
    %c0_6 = arith.constant 0 : index
    %c0_7 = arith.constant 0 : index
    %13 = vector.load %arg3[%c1, %c0_6, %c0_7] : memref<3x72x128xf32, #tpu.memory_space<vmem>>, vector<1x72x128xf32>
    %14 = vector.shape_cast %13 : vector<1x72x128xf32> to vector<72x128xf32>
    %cst_8 = arith.constant dense<0.000000e+00> : vector<8x128xf32>
    %15 = tpu.matmul %12, %14, %cst_8 {dimension_numbers = #tpu.dot_dimension_numbers<[1], [0], [0], [1], [0, 0, 1, 1], [], []>} : vector<8x72xf32>, vector<72x128xf32>, vector<8x128xf32> -> vector<8x128xf32>
    %16 = arith.addf %8, %15 : vector<8x128xf32>
    %c2_i32 = arith.constant 2 : i32
    %17 = arith.addi %1, %c2_i32 : i32
    %c0_9 = arith.constant 0 : index
    %18 = arith.index_cast %17 : i32 to index
    %c0_10 = arith.constant 0 : index
    %19 = vector.load %arg2[%c0_9, %18, %c0_10] : memref<1x18x72xf32, #tpu.memory_space<vmem>>, vector<1x8x72xf32>
    %20 = vector.shape_cast %19 : vector<1x8x72xf32> to vector<8x72xf32>
    %c2 = arith.constant 2 : index
    %c0_11 = arith.constant 0 : index
    %c0_12 = arith.constant 0 : index
    %21 = vector.load %arg3[%c2, %c0_11, %c0_12] : memref<3x72x128xf32, #tpu.memory_space<vmem>>, vector<1x72x128xf32>
    %22 = vector.shape_cast %21 : vector<1x72x128xf32> to vector<72x128xf32>
    %cst_13 = arith.constant dense<0.000000e+00> : vector<8x128xf32>
    %23 = tpu.matmul %20, %22, %cst_13 {dimension_numbers = #tpu.dot_dimension_numbers<[1], [0], [0], [1], [0, 0, 1, 1], [], []>} : vector<8x72xf32>, vector<72x128xf32>, vector<8x128xf32> -> vector<8x128xf32>
    %24 = arith.addf %16, %23 : vector<8x128xf32>
    %c0_14 = arith.constant 0 : index
    %c0_15 = arith.constant 0 : index
    %25 = vector.load %arg4[%c0_14, %c0_15] : memref<1x128xf32, #tpu.memory_space<vmem>>, vector<1x128xf32>
    %26 = vector.broadcast %25 : vector<1x128xf32> to vector<8x128xf32>
    %27 = arith.mulf %24, %26 : vector<8x128xf32>
    %c0_16 = arith.constant 0 : index
    %c0_17 = arith.constant 0 : index
    %28 = vector.load %arg5[%c0_16, %c0_17] : memref<1x128xf32, #tpu.memory_space<vmem>>, vector<1x128xf32>
    %29 = vector.broadcast %28 : vector<1x128xf32> to vector<8x128xf32>
    %30 = arith.addf %27, %29 : vector<8x128xf32>
    %cst_18 = arith.constant 0.000000e+00 : f32
    %31 = vector.broadcast %cst_18 : f32 to vector<8x128xf32>
    %32 = arith.maximumf %30, %31 : vector<8x128xf32>
    %c0_19 = arith.constant 0 : index
    %c0_20 = arith.constant 0 : index
    %c0_21 = arith.constant 0 : index
    %33 = vector.load %arg6[%c0_19, %c0_20, %c0_21] : memref<1x8x128xf32, #tpu.memory_space<vmem>>, vector<1x8x128xf32>
    %34 = vector.shape_cast %33 : vector<1x8x128xf32> to vector<8x128xf32>
    %35 = vector.shape_cast %32 : vector<8x128xf32> to vector<1x8x128xf32>
    tpu.vector_store %arg6[%c0_19, %c0_20, %c0_21], %35 {strides = array<i32>} : memref<1x8x128xf32, #tpu.memory_space<vmem>>, vector<1x8x128xf32>,
    return
  }
  func.func @transform_0(%arg0: i32, %arg1: i32) -> (i32, i32, i32) {
    %c0_i32 = arith.constant 0 : i32
    %c0_i32_0 = arith.constant 0 : i32
    %c0_i32_1 = arith.constant 0 : i32
    return %arg0, %c0_i32, %c0_i32_0 : i32, i32, i32
  }
  func.func @transform_1(%arg0: i32, %arg1: i32) -> (i32, i32, i32) {
    %c0_i32 = arith.constant 0 : i32
    %c0_i32_0 = arith.constant 0 : i32
    %c0_i32_1 = arith.constant 0 : i32
    %c0_i32_2 = arith.constant 0 : i32
    return %c0_i32, %c0_i32_0, %c0_i32_1 : i32, i32, i32
  }
  func.func @transform_2(%arg0: i32, %arg1: i32) -> (i32, i32) {
    %c0_i32 = arith.constant 0 : i32
    %c0_i32_0 = arith.constant 0 : i32
    %c0_i32_1 = arith.constant 0 : i32
    return %c0_i32, %c0_i32_0 : i32, i32
  }
  func.func @transform_3(%arg0: i32, %arg1: i32) -> (i32, i32) {
    %c0_i32 = arith.constant 0 : i32
    %c0_i32_0 = arith.constant 0 : i32
    %c0_i32_1 = arith.constant 0 : i32
    return %c0_i32, %c0_i32_0 : i32, i32
  }
  func.func @transform_4(%arg0: i32, %arg1: i32) -> (i32, i32, i32) {
    %c0_i32 = arith.constant 0 : i32
    %c0_i32_0 = arith.constant 0 : i32
    return %arg0, %arg1, %c0_i32 : i32, i32, i32
  }
}

</mosaic_0001>

<bundles_post_ra>
// kernel: tpu_custom_call.1
= control target key start
LH: loop header
LB: loop body
LE: loop exit
PB: predicated region body
PF: predicated region fallthrough
CT: control target
= control target key end

     0   :  { %9 = vsyncpa [#allocation3], 0  ;;  %s1223_s0 = inlined_call_operand.vmem [shape: f32[2,18,72], index: 0, kind: input, shape index: {}]   ;;  %s1224_s1 = inlined_call_operand.hbm [shape: f32[3,72,128], index: 1, kind: input, shape index: {}]   ;;  %s1225_s2 = inlined_call_operand.vmem [shape: f32[1,128], index: 2, kind: input, shape index: {}]   ;;  %s1226_s3 = inlined_call_operand.vmem [shape: f32[1,128], index: 3, kind: input, shape index: {}]   ;;  %s1227_s4 = inlined_call_operand.hbm [shape: f32[2,16,128], index: 4, kind: output, shape index: {}]  }
   0x1   :  { %10 = vsyncpa [#allocation4], 0 }
   0x2   :  { %12 = vsyncpa [#allocation4 + $0x1], 0  ;;  %s1014_s15 = smov 0   ;;  %s1016_s16 = smov 0  }
   0x3   :  { %s1018_s17 = smov 0   ;;  %s1020_s18 = smov 0  }
   0x4   :  { %s1022_s19 = smov 0   ;;  %s1024_s20 = smov 0  }
   0x5   :  { %s1026_s21 = smov 0   ;;  %s1028_s22 = smov 0  }
   0x6 LB: > { %s610_s23 = sadd.s32 4294967295, %s980_s22   ;;  %s611_s24 = sadd.s32 4294967294, %s980_s22   ;;  %s980_s22 = sphi %s1028_s22, %s18_s22   ;;  %s976_s21 = sphi %s1026_s21, %s1247_s21   ;;  %s972_s20 = sphi %s1024_s20, %s1246_s20   ;;  %s968_s19 = sphi %s1022_s19, %s1245_s19   ;;  %s964_s18 = sphi %s1020_s18, %s1244_s18   ;;  %s960_s17 = sphi %s1018_s17, %s1243_s17   ;;  %s956_s16 = sphi %s1016_s16, %s1242_s16   ;;  %s952_s15 = sphi %s1014_s15, %s1241_s15  }
   0x7   : > { %s27_s25 = sadd.s32 1, %s972_s20  ;;  %s30_s26 = sadd.s32 1, %s976_s21 }
   0x8   : > { %p28_p0 = scmp.ge.s32.totalorder %s27_s25, 2  ;;  %s128_s27 = sadd.s32 1, %s960_s17 }
   0x9   : > { %p138_p1 = scmp.ne.s32.totalorder %s960_s17, %s956_s16  ;;  %p139_p2 = scmp.eq.s32.totalorder %s610_s23, 3 }
   0xa   : > { %s1249_s25 = smov (%p28_p0, %s27_s25), 0  ;;  %s1251_s26 = smov (!%p28_p0, %s30_s26), %s976_s21 }
   0xb   : > { %s124_s28 = ssub.s32 %s972_s20, %s1249_s25  ;;  %p1066_p3 = por %p139_p2, %p138_p1 }
   0xc   : > { %p32_p4 = scmp.ge.s32.totalorder %s1251_s26, 2  ;;  %p144_p5 = scmp.ne.s32.totalorder %s956_s16, %s952_s15 }
   0xd   : > { %s1232_s29 = scalar_select %p1066_p3, 1, 0 }
   0xe   : > { %p145_p6 = scmp.eq.s32.totalorder %s611_s24, 3  ;;  %p612_p7 = scmp.ge.s32.totalorder %s980_s22, 1 }
   0xf   : > { %s1253_s26 = smov (%p32_p4, %s1251_s26), 0  ;;  %p152_p9 = scmp.lt.s32.totalorder %s980_s22, 5 }
  0x10   : > { %p1075_p8 = por %p145_p6, %p144_p5  ;;  %s123_s5 = ssub.s32 %s976_s21, %s1253_s26 }
  0x11   : > { %s125_s6 = sor.u32 %s124_s28, %s123_s5  ;;  %p1082_p10 = pnand %p612_p7, %p152_p9 }
  0x12   : > { %s1233_s30 = scalar_select %p1075_p8, 1, 0 }
  0x13   : > { %s1234_s7 = scalar_select %p1082_p10, 1, 0 }
  0x14   : > { %p126_p11 = scmp.eq.s32.totalorder %s125_s6, 0  ;;  %p1086_p12 = scmp.eq.s32.totalorder %s610_s23, 0 }
  0x15   : > { %p773_p13 = pneg %p1082_p10  ;;  %s982_s10 = smov [#allocation2]  }
  0x16   : > { %s1235_s8 = scalar_select %p1086_p12, 1, 0 }
  0x17   : > { %s1093_s9 = scalar_select %p126_p11, %s960_s17, %s128_s27  }
  0x18   : > { %s164_s11 = sshll.u32 %s982_s10, 4  ;;  %p1097_p0 = pnand %p1086_p12, %p773_p13  ;;  %s165_s11 = int_to_ptr.vmem [resolvable:$true] %s164_s11 }
  0x19   : > { %s854_s23 = scalar_lea.hbm %s1224_s1, 3456 }
  0x1a   : > { %p855_p1 = scmp.ne.s32.totalorder %s1224_s1, %s854_s23  ;;  %p856_p2 = pneg %p1097_p0 }
  0x1b   : > { %p861_p6 = scmp.lt.u32.totalorder %s854_s23, %s1224_s1 }
  0x1c   : > { %p857_p4 = pnand %p856_p2, %p855_p1 }
  0x1e   : > { %p858_p5 = pneg %p857_p4 }
  0x20   : > { %p863_p7 = pnand %p861_p6, %p858_p5 }
  0x22   : > { %866 = shalt.err (!%p863_p7)
}
  0x23   : > { %s867_s6 = scalar_lea.vmem %s165_s11, 3456  ;;  %p875_p8 = scmp.lt.s32.totalorder %s165_s11, %s165_s11 }
  0x24   : > { %p868_p9 = scmp.ne.s32.totalorder %s165_s11, %s867_s6  ;;  %p876_p3 = scmp.lt.s32.totalorder %s867_s6, %s867_s6 }
  0x26   : > { %p870_p11 = pnand %p868_p9, %p856_p2  ;;  %p877_p12 = por %p876_p3, %p875_p8 }
  0x28   : > { %p871_p13 = pneg %p870_p11 }
  0x2a   : > { %p878_p10 = pnand %p877_p12, %p871_p13 }
  0x2c   : > { %881 = shalt.err (!%p878_p10)
}
  0x2d   : > { %s983_s10 = smov 128   ;;  %s984_s13 = smov 8  }
  0x2e   : > { %776 = dma.hbm_to_vmem [thread:$0]  (!%p1097_p0), %s1224_s1, 3456, %s165_s11, [#allocation3], %s983_s10, %s983_s10, %s984_s13  }
  0x2f   : > { %p1237_p1 = scmp.ne.s32.totalorder %s1234_s7, 0 }
  0x30   : > { %p1238_p4 = scmp.ne.s32.totalorder (!%p1237_p1), %s1235_s8, 0 }
  0x31   : > { %194 = sbr.rel (%p1237_p1) target bundleno = 330 (0x14a), region = 36 }
  0x38   : > { %943 = dma.done.wait (%p1238_p4), [#allocation3], 3456  }
  0x39   : > { %945 = vsyncadd (%p1238_p4), [#allocation3], 4294963840  ;;  %v985_v0 = vmov 0.0|0.0   ;;  %vm986_vm0 = vmmov 0   ;;  %v987_v1 = vmov 0.0   ;;  %p220_p3 = scmp.lt.s32.totalorder %s968_s19, 1 }
  0x3a   : > { %739 = vmatprep.subr.bf16.mxu0 %v985_v0  ;;  %727 = vmatprep.subr.bf16.mxu1 %v985_v0  ;;  %v228_v2 = vld [vmem:[#allocation2] sm:$0xff]  ;;  %v229_v3 = vld [vmem:[#allocation2 + $0x8] sm:$0xff]  ;;  %v230_v4 = vld [vmem:[#allocation2 + $0x10] sm:$0xff]  ;;  %s619_s28 = sshll.u32 %s964_s18, 3  ;;  %vm250_vm1 = vcmask 588800   ;;  %s217_s5 = sand.u32 1, %s956_s16  }
  0x3b   : > { %703 = vmatprep.mubr.msk.f32.mxu0 %vm986_vm0, %v987_v1  ;;  %682 = vmatprep.mubr.msk.f32.mxu1 %vm986_vm0, %v987_v1  ;;  %v740_v5 = vpack.c.bf16 %v229_v3, %v228_v2  ;;  %v231_v6 = vld [vmem:[#allocation2 + $0x18] sm:$0xff]  ;;  %v241_v8 = vld [vmem:[#allocation2 + $0x48] sm:$0xff]  ;;  %v242_v9 = vld [vmem:[#allocation2 + $0x50] sm:$0xff]  ;;  %s221_s7 = scalar_select %p220_p3, %s968_s19, 1 }
  0x3c   : > { %v743_v7 = vpack.c.bf16 %v231_v6, %v230_v4  ;;  %v232_v10 = vld [vmem:[#allocation2 + $0x20] sm:$0xff]  ;;  %v233_v11 = vld [vmem:[#allocation2 + $0x28] sm:$0xff]  ;;  %v728_v12 = vpack.c.bf16 %v242_v9, %v241_v8  ;;  %v243_v13 = vld [vmem:[#allocation2 + $0x58] sm:$0xff]  ;;  %s617_s6 = sshll.u32 %s217_s5, 3  ;;  %s630_s10 = sshll.u32 %s968_s19, 1 }
  0x3d   : > { %741 = vmatpush3.bf16.msra.mxu0 %v740_v5  ;;  %v244_v14 = vld [vmem:[#allocation2 + $0x60] sm:$0xff]  ;;  %v746_v16 = vpack.c.bf16 %v233_v11, %v232_v10  ;;  %s766_s8 = smul.u32 24, %s221_s7  ;;  %v245_v17 = vld [vmem:[#allocation2 + $0x68] sm:$0xff]  ;;  %v246_v18 = vld [vmem:[#allocation2 + $0x70] sm:$0xff]  ;;  %s514_s24 = sadd.s32 %s964_s18, %s630_s10 }
  0x3e   : > { %742 = vmatprep.subr.bf16.mxu0 %v985_v0  ;;  %729 = vmatpush3.bf16.msra.mxu1 %v728_v12  ;;  %v731_v15 = vpack.c.bf16 %v244_v14, %v243_v13  ;;  %v234_v19 = vld [vmem:[#allocation2 + $0x30] sm:$0xff]  ;;  %v235_v20 = vld [vmem:[#allocation2 + $0x38] sm:$0xff]  ;;  %v734_v21 = vpack.c.bf16 %v246_v18, %v245_v17  ;;  %v248_v24 = vld [vmem:[#allocation2 + $0x80] sm:$0xff]  ;;  %s631_s11 = sshll.u32 %s514_s24, 7  ;;  %s219_s12 = scalar_lea.vmem [#allocation5], %s617_s6 }
  0x3f   : > { %730 = vmatprep.subr.bf16.mxu1 %v985_v0  ;;  %v749_v22 = vpack.c.bf16 %v235_v20, %v234_v19  ;;  %s224_s23 = scalar_lea.vmem %s1223_s0, %s766_s8  ;;  %v247_v23 = vld [vmem:[#allocation2 + $0x78] sm:$0xff]  ;;  %v401_v25 = vld [vmem:[#allocation2 + $0x90] sm:$0xff]  ;;  %v236_v28 = vld [vmem:[#allocation2 + $0x40] sm:$0xff]  ;;  %s503_s18 = scalar_lea.sflag [#allocation4], %s217_s5 }
  0x40   : > { %s1140_s27 = scalar_lea.vmem %s224_s23, %s619_s28  ;;  %v402_v26 = vld [vmem:[#allocation2 + $0x98] sm:$0xff]  ;;  %v737_v27 = vpack.c.bf16 %v248_v24, %v247_v23  ;;  %v403_v31 = vld [vmem:[#allocation2 + $0xa0] sm:$0xff]  ;;  %v404_v32 = vld [vmem:[#allocation2 + $0xa8] sm:$0xff]  ;;  %s518_s23 = sshll.u32 %s219_s12, 4  ;;  %s1172_s23 = int_to_ptr.vmem [resolvable:$true] %s518_s23 }
  0x41   : > { %744 = vmatpush3.bf16.msra.mxu0 %v743_v7  ;;  %v227_v29 = vld [vmem:[%s1140_s27] sm:$0xff]  ;;  %v752_v30 = vpack.c.bf16 %v402_v26, %v401_v25  ;;  %v249_v33 = vld [vmem:[#allocation2 + $0x88] sm:$0xff]  ;;  %v755_v35 = vpack.c.bf16 %v404_v32, %v403_v31  ;;  %v406_v37 = vld [vmem:[#allocation2 + $0xb8] sm:$0xff]  ;;  %s882_s10 = scalar_lea.vmem %s1172_s23, 128  ;;  %p1239_p10 = scmp.ne.s32.totalorder %s1232_s29, 0 }
  0x42   : > { %745 = vmatprep.subr.bf16.mxu0 %v985_v0  ;;  %732 = vmatpush3.bf16.msra.mxu1 %v731_v15  ;;  %v621_v34 = vld [vmem:[%s1140_s27 + $0x1] sm:$0xff]  ;;  %v407_v39 = vld [vmem:[#allocation2 + $0xc0] sm:$0xff]  ;;  %v408_v40 = vld [vmem:[#allocation2 + $0xc8] sm:$0xff]  ;;  %p883_p8 = scmp.ne.s32.totalorder %s1172_s23, %s882_s10  ;;  %s988_s6 = smov [#allocation5]  }
  0x43   : > { %733 = vmatprep.subr.bf16.mxu1 %v985_v0  ;;  %v405_v36 = vld [vmem:[#allocation2 + $0xb0] sm:$0xff]  ;;  %v761_v41 = vpack.c.bf16 %v408_v40, %v407_v39  ;;  %s886_s13 = sshll.u32 %s988_s6, 4  ;;  %s887_s13 = int_to_ptr.vmem [resolvable:$false] %s886_s13 }
  0x44   : > { %v758_v38 = vpack.c.bf16 %v406_v37, %v405_v36  ;;  %v409_v42 = vld [vmem:[#allocation2 + $0xd0] sm:$0xff]  ;;  %p884_p12 = pnand %p883_p8, %p1239_p10  ;;  %s888_s14 = scalar_lea.vmem %s887_s13, 256 }
  0x45   : > { %747 = vmatpush3.bf16.msra.mxu0 %v746_v16  ;;  %v625_v43 = vld [vmem:[%s1140_s27 + $0x2] sm:$0xff]  ;;  %v627_v47 = vld [vmem:[%s1225_s2] ss:$0 sm:$0xff]  ;;  %s1170_s27 = scalar_lea.hbm %s1227_s4, %s631_s11  ;;  %p889_p2 = scmp.lt.s32.totalorder %s1172_s23, %s887_s13 }
  0x46   : > { %748 = vmatprep.subr.bf16.mxu0 %v985_v0  ;;  %735 = vmatpush3.bf16.msra.mxu1 %v734_v21  ;;  %v628_v50 = vld [vmem:[%s1226_s3] ss:$0 sm:$0xff]  ;;  %p885_p0 = pneg %p884_p12  ;;  %p890_p5 = scmp.lt.s32.totalorder %s888_s14, %s882_s10 }
  0x47   : > { %736 = vmatprep.subr.bf16.mxu1 %v985_v0 }
  0x48   : > { %p891_p6 = por %p890_p5, %p889_p2 }
  0x49   : > { %750 = vmatpush3.bf16.msra.mxu0 %v749_v22 }
  0x4a   : > { %701 = vmatprep.subr.mxu0 %v987_v1  ;;  %738 = vmatpush3.bf16.msra.mxu1 %v737_v27  ;;  %p892_p7 = pnand %p891_p6, %p885_p0 }
  0x4b   : > { %680 = vmatprep.subr.mxu1 %v987_v1 }
  0x4d   : > { %702 = vmatpush3.msra.mxu0 %v236_v28 }
  0x4e   : > { %751 = vmatprep.subr.bf16.mxu0 %v985_v0  ;;  %704 = vmatmul.mubr.msk.f32.vlgmr.msra.gmra.mrb[0].mxu0 %vm250_vm1, %v227_v29 }
  0x4f   : > { %753 = vmatpush3.bf16.msra.mxu0 %v752_v30  ;;  %724 = vmatprep.mubr.msk.f32.mxu0 %vm986_vm0, %v987_v1 }
  0x50   : > { %754 = vmatprep.subr.bf16.mxu0 %v985_v0  ;;  %681 = vmatpush3.msra.mxu1 %v249_v33 }
  0x51   : > { %683 = vmatmul.mubr.msk.f32.vlgmr.msra.gmra.mrb[0].mxu1 %vm250_vm1, %v621_v34 }
  0x53   : > { %756 = vmatpush3.bf16.msra.mxu0 %v755_v35 }
  0x54   : > { %757 = vmatprep.subr.bf16.mxu0 %v985_v0 }
  0x57   : > { %759 = vmatpush3.bf16.msra.mxu0 %v758_v38 }
  0x58   : > { %760 = vmatprep.subr.bf16.mxu0 %v985_v0 }
  0x5b   : > { %762 = vmatpush3.bf16.msra.mxu0 %v761_v41 }
  0x5c   : > { %722 = vmatprep.subr.mxu0 %v987_v1 }
  0x5f   : > { %723 = vmatpush3.msra.mxu0 %v409_v42 }
  0x60   : > { %725 = vmatmul.mubr.msk.f32.vlgmr.msra.gmra.mrb[0].mxu0 %vm250_vm1, %v625_v43 }
 0x124   : > { %v320_v44 = vpop.f32.mrb[0].mxu1 }
 0x125   : > { %v684_v45 = vpop.f32.mrb[1].mxu1 }
 0x133   : > { %v479_v46 = vpop.f32.mrb[0].mxu0 }
 0x134   : > { %v763_v48 = vadd.f32 %v479_v46, %v320_v44  ;;  %v726_v49 = vpop.f32.mrb[1].mxu0 }
 0x136   : > { %v491_v51 = vmul.f32 %v763_v48, %v627_v47 }
 0x138   : > { %v499_v52 = vadd.f32 %v628_v50, %v491_v51 }
 0x13a   : > { %v500_v53 = vmax.f32 %v499_v52, 0.0 }
 0x13c   : > { %501 = vst [vmem:[%s219_s12] sm:$0xff] %v500_v53 }
 0x13d   : > { %895 = shalt.err (!%p892_p7)
}
 0x13e   : > { %s896_s5 = scalar_lea.hbm %s1170_s27, 128  ;;  %s900_s8 = scalar_lea.hbm %s1227_s4, 512 }
 0x13f   : > { %p897_p9 = scmp.ne.s32.totalorder %s1170_s27, %s896_s5  ;;  %p901_p1 = scmp.lt.u32.totalorder %s1170_s27, %s1227_s4 }
 0x140   : > { %p902_p4 = scmp.lt.u32.totalorder %s900_s8, %s896_s5  ;;  %p904_p8 = scmp.lt.u32.totalorder %s896_s5, %s1170_s27 }
 0x141   : > { %p898_p11 = pnand %p897_p9, %p1239_p10 }
 0x142   : > { %p903_p3 = por %p902_p4, %p901_p1 }
 0x143   : > { %p899_p13 = pneg %p898_p11 }
 0x144   : > { %p905_p12 = por %p904_p8, %p903_p3 }
 0x146   : > { %p906_p0 = pnand %p905_p12, %p899_p13 }
 0x148   : > { %909 = shalt.err (!%p906_p0)
}
 0x149   : > { %771 = dma.vmem_to_hbm [thread:$0]  (%p1239_p10), %s1172_s23, 128, %s1170_s27, %s503_s18  }
 0x14a PF: > { %p783_p2 = scmp.ge.s32.totalorder %s980_s22, 2  ;;  %s530_s19 = sand.u32 1, %s952_s15  }
 0x14b   : > { %p1240_p5 = scmp.ne.s32.totalorder %s1233_s30, 0  ;;  %s531_s28 = scalar_lea.sflag [#allocation4], %s530_s19 }
 0x14d   : > { %p778_p6 = pnand %p783_p2, %p1240_p5 }
 0x14f   : > { %947 = dma.done.wait (!%p778_p6), %s531_s28, 128  }
 0x150   : > { %949 = vsyncadd (!%p778_p6), %s531_s28, 4294967168  ;;  %s18_s22 = sadd.s32 1, %s980_s22   ;;  %s1241_s15 = smov %s956_s16 }
 0x151   : > { %p15_p7 = scmp.ge.s32.totalorder %s18_s22, 6   ;;  %s1242_s16 = smov %s960_s17 }
 0x152   : > { %s1243_s17 = smov %s1093_s9  ;;  %s1244_s18 = smov %s972_s20 }
 0x153   : > { %s1245_s19 = smov %s976_s21  ;;  %s1246_s20 = smov %s1249_s25 }
 0x154   : > { %s1247_s21 = smov %s1253_s26  ;;  %17 = sbr.rel (!%p15_p7) target bundleno = 6 (0x6), region = 81 }
 0x15b   :  { %536 = vsyncpa [#allocation3], 1 }
 0x15c   :  { %538 = vsyncpa [#allocation3 + $0x1], 1 }
 0x15d   :  { %539 = vsyncpa [#allocation4], 1 }
 0x15e   :  { %541 = vsyncpa [#allocation4 + $0x1], 1 }

</bundles_post_ra>
